<compile_context>
chip_gen: v7x
topology: tpu7x:2x2x1
jax: 0.10.0
libtpu: 0.0.40
codegen_flags: <defaults>
</compile_context>

<pallas_src>
import functools
import math

import jax
import jax.numpy as jnp
from jax.experimental import pallas as pl
from jax.experimental.pallas import tpu as pltpu

_BATCH_ALIGN = 16   # row-tile granularity (covers bf16 sublane packing as well)


def _round_up(x, m):
    return ((x + m - 1) // m) * m


def _cdiv(a, b):
    return (a + b - 1) // b


def _mlp_kernel(*refs, n_layers, acts):
    """Fused MLP on one resident batch tile.

    refs = (x_ref, w0_ref, b0_ref, ..., w{n-1}_ref, b{n-1}_ref, o_ref)
    Matmul inputs are bf16 (MXU native) with f32 accumulation; the bias-add /
    tanh epilogue stays in f32 and is cast to bf16 only before the next matmul.
    """
    x_ref = refs[0]
    o_ref = refs[-1]
    h = x_ref[...]                              # bf16 batch tile
    for i in range(n_layers):
        w = refs[1 + 2 * i][...]                # (din, dout), bf16
        b = refs[2 + 2 * i][...]                # (1, dout),   f32
        y = jnp.dot(h.astype(w.dtype), w, preferred_element_type=jnp.float32)
        y = y + b                               # f32, broadcasts over rows
        if acts[i] == "tanh":
            y = jnp.tanh(y)
        elif acts[i] == "Identify":
            pass
        else:
            raise ValueError(f"unsupported activation: {acts[i]}")
        h = y                                   # f32; next iter casts post-tanh
    o_ref[...] = h.astype(o_ref.dtype)


def build_params(conf, key):
    """Deterministic parameter init; shapes match nn.Linear ([in, out] storage)."""
    layer_conf = conf["layer"]
    dim_conf = conf["dim"]
    layer_size = layer_conf["layer_size"]
    if isinstance(layer_size, (int, float)):
        layer_size = [int(layer_size)] * layer_conf["layer_n"]
    else:
        assert len(layer_size) == layer_conf["layer_n"]

    dims = [dim_conf["input_dim"]] + list(layer_size) + [dim_conf["output_dim"]]
    params = []
    for i in range(len(dims) - 1):
        din, dout = dims[i], dims[i + 1]
        key, kw, kb = jax.random.split(key, 3)
        bound = 1.0 / math.sqrt(din)  # same scale as PyTorch's default Linear init
        w = jax.random.uniform(kw, (din, dout), jnp.float32, -bound, bound)
        b = jax.random.uniform(kb, (dout,), jnp.float32, -bound, bound)
        params.append((w, b))
    return params


def prepare_params(params):
    """One-time parameter prep: bf16 weights for the MXU, (1, dout) f32 biases."""
    return tuple(
        (w.astype(jnp.bfloat16), b.astype(jnp.float32).reshape(1, -1))
        for w, b in params
    )


def activations_from_conf(conf, n_layers):
    layer_conf = conf["layer"]
    return tuple(
        layer_conf["final_activate"] if i == n_layers - 1 else layer_conf["activate"]
        for i in range(n_layers)
    )


def fully_connected_forward(x, prepared_params, acts, *, batch_tile=2048):
    """Whole-MLP forward in a single fused Pallas kernel (no feature padding)."""
    n_layers = len(prepared_params)
    assert len(acts) == n_layers
    B, din0 = x.shape
    dout_final = prepared_params[-1][0].shape[1]

    # Batch tile: big (amortizes the ~0.35 us per grid step), 16-row aligned,
    # and capped at ceil(B/2) so large batches give >= 2 grid steps (v7x cores).
    TB = min(int(batch_tile), _round_up(_cdiv(B, 2), _BATCH_ALIGN))
    TB = max(TB, _BATCH_ALIGN)
    Bp = _round_up(B, TB)

    x_bf16 = x.astype(jnp.bfloat16)
    if Bp != B:
        x_bf16 = jnp.zeros((Bp, din0), jnp.bfloat16).at[:B].set(x_bf16)

    flat_inputs = [x_bf16]
    in_specs = [pl.BlockSpec((TB, din0), lambda i: (i, 0))]
    for w, b in prepared_params:
        flat_inputs += [w, b]
        in_specs += [
            pl.BlockSpec(w.shape, lambda i: (0, 0)),   # whole weight, resident
            pl.BlockSpec(b.shape, lambda i: (0, 0)),   # whole bias, resident
        ]

    # Advisory cost estimate from the true (unpadded) shapes.
    flops = 2 * Bp * sum(w.shape[0] * w.shape[1] for w, _ in prepared_params)
    transcendentals = Bp * sum(
        prepared_params[i][0].shape[1] for i in range(n_layers) if acts[i] == "tanh")
    bytes_accessed = (
        sum(int(math.prod(a.shape)) * a.dtype.itemsize for a in flat_inputs)
        + Bp * dout_final * 4
    )

    kernel = functools.partial(_mlp_kernel, n_layers=n_layers, acts=tuple(acts))
    out = pl.pallas_call(
        kernel,
        out_shape=jax.ShapeDtypeStruct((Bp, dout_final), jnp.float32),
        grid=(Bp // TB,),
        in_specs=in_specs,
        out_specs=pl.BlockSpec((TB, dout_final), lambda i: (i, 0)),
        compiler_params=pltpu.CompilerParams(
            dimension_semantics=("parallel",),
        ),
        cost_estimate=pl.CostEstimate(
            flops=flops,
            transcendentals=transcendentals,
            bytes_accessed=bytes_accessed,
        ),
    )(*flat_inputs)

    if Bp != B:
        out = out[:B]
    return out


def reference_forward(params, acts, x):
    """Pure-JAX reference mirroring the kernel's mixed precision
    (bf16 matmul inputs, f32 accumulation, f32 bias/tanh epilogue)."""
    h = x.astype(jnp.float32)
    for i, (w, b) in enumerate(params):
        h = jnp.dot(h.astype(jnp.bfloat16), w.astype(jnp.bfloat16),
                    preferred_element_type=jnp.float32) + b.astype(jnp.float32)
        if acts[i] == "tanh":
            h = jnp.tanh(h)
    return h


if __name__ == "__main__":
    conf = {
        "layer": {
            "layer_size": 32,
            "layer_n": 2,
            "activate": "tanh",
            "norm": False,
            "final_activate": "Identify",
        },
        "dim": {"input_dim": 16, "output_dim": 8},
    }

    key = jax.random.PRNGKey(0)
    key, kx = jax.random.split(key)
    batch = 8
    x = jax.random.normal(kx, (batch, conf["dim"]["input_dim"]), jnp.float32)

    params = build_params(conf, key)
    prepared = prepare_params(params)           # hoisted one-time param prep
    acts = activations_from_conf(conf, len(params))

    forward = jax.jit(fully_connected_forward,
                      static_argnames=("acts", "batch_tile"))
    out = jax.block_until_ready(forward(x, prepared, acts=acts))

    ref = reference_forward(params, acts, x)
    assert out.shape == (batch, conf["dim"]["output_dim"])
    assert jnp.allclose(out, ref, atol=2e-3, rtol=2e-3), float(
        jnp.max(jnp.abs(out - ref)))

    print("KERNEL_OK")
</pallas_src>

<mosaic_0001>
module attributes {stable_mosaic.version = 11 : i64} {
  func.func @_mlp_kernel(%arg0: i32, %arg1: memref<16x16xbf16, #tpu.memory_space<vmem>>, %arg2: memref<16x32xbf16, #tpu.memory_space<vmem>>, %arg3: memref<1x32xf32, #tpu.memory_space<vmem>>, %arg4: memref<32x32xbf16, #tpu.memory_space<vmem>>, %arg5: memref<1x32xf32, #tpu.memory_space<vmem>>, %arg6: memref<32x8xbf16, #tpu.memory_space<vmem>>, %arg7: memref<1x8xf32, #tpu.memory_space<vmem>>, %arg8: memref<16x8xf32, #tpu.memory_space<vmem>>) attributes {dimension_semantics = [#tpu.dimension_semantics<parallel>], iteration_bounds = array<i64: 1>, scalar_prefetch = 0 : i64, scratch_operands = 0 : i64, tpu.core_type = #tpu.core_type<tc>, window_params = [{transform_indices = @transform_0, window_bounds = array<i64: 16, 16>}, {pipeline_mode = #tpu.pipeline_mode<synchronous>, transform_indices = @transform_1, window_bounds = array<i64: 16, 32>}, {pipeline_mode = #tpu.pipeline_mode<synchronous>, transform_indices = @transform_2, window_bounds = array<i64: 1, 32>}, {pipeline_mode = #tpu.pipeline_mode<synchronous>, transform_indices = @transform_3, window_bounds = array<i64: 32, 32>}, {pipeline_mode = #tpu.pipeline_mode<synchronous>, transform_indices = @transform_4, window_bounds = array<i64: 1, 32>}, {pipeline_mode = #tpu.pipeline_mode<synchronous>, transform_indices = @transform_5, window_bounds = array<i64: 32, 8>}, {pipeline_mode = #tpu.pipeline_mode<synchronous>, transform_indices = @transform_6, window_bounds = array<i64: 1, 8>}, {transform_indices = @transform_7, window_bounds = array<i64: 16, 8>}]} {
    %c0 = arith.constant 0 : index
    %c0_0 = arith.constant 0 : index
    %0 = vector.load %arg1[%c0, %c0_0] : memref<16x16xbf16, #tpu.memory_space<vmem>>, vector<16x16xbf16>
    %c0_1 = arith.constant 0 : index
    %c0_2 = arith.constant 0 : index
    %1 = vector.load %arg2[%c0_1, %c0_2] : memref<16x32xbf16, #tpu.memory_space<vmem>>, vector<16x32xbf16>
    %c0_3 = arith.constant 0 : index
    %c0_4 = arith.constant 0 : index
    %2 = vector.load %arg3[%c0_3, %c0_4] : memref<1x32xf32, #tpu.memory_space<vmem>>, vector<1x32xf32>
    %cst = arith.constant dense<0.000000e+00> : vector<16x32xf32>
    %3 = tpu.matmul %0, %1, %cst {dimension_numbers = #tpu.dot_dimension_numbers<[1], [0], [0], [1], [0, 0, 1, 1], [], []>} : vector<16x16xbf16>, vector<16x32xbf16>, vector<16x32xf32> -> vector<16x32xf32>
    %4 = vector.broadcast %2 : vector<1x32xf32> to vector<16x32xf32>
    %5 = arith.addf %3, %4 : vector<16x32xf32>
    %6 = math.tanh %5 : vector<16x32xf32>
    %c0_5 = arith.constant 0 : index
    %c0_6 = arith.constant 0 : index
    %7 = vector.load %arg4[%c0_5, %c0_6] : memref<32x32xbf16, #tpu.memory_space<vmem>>, vector<32x32xbf16>
    %c0_7 = arith.constant 0 : index
    %c0_8 = arith.constant 0 : index
    %8 = vector.load %arg5[%c0_7, %c0_8] : memref<1x32xf32, #tpu.memory_space<vmem>>, vector<1x32xf32>
    %9 = arith.truncf %6 : vector<16x32xf32> to vector<16x32xbf16>
    %cst_9 = arith.constant dense<0.000000e+00> : vector<16x32xf32>
    %10 = tpu.matmul %9, %7, %cst_9 {dimension_numbers = #tpu.dot_dimension_numbers<[1], [0], [0], [1], [0, 0, 1, 1], [], []>} : vector<16x32xbf16>, vector<32x32xbf16>, vector<16x32xf32> -> vector<16x32xf32>
    %11 = vector.broadcast %8 : vector<1x32xf32> to vector<16x32xf32>
    %12 = arith.addf %10, %11 : vector<16x32xf32>
    %13 = math.tanh %12 : vector<16x32xf32>
    %c0_10 = arith.constant 0 : index
    %c0_11 = arith.constant 0 : index
    %14 = vector.load %arg6[%c0_10, %c0_11] : memref<32x8xbf16, #tpu.memory_space<vmem>>, vector<32x8xbf16>
    %c0_12 = arith.constant 0 : index
    %c0_13 = arith.constant 0 : index
    %15 = vector.load %arg7[%c0_12, %c0_13] : memref<1x8xf32, #tpu.memory_space<vmem>>, vector<1x8xf32>
    %16 = arith.truncf %13 : vector<16x32xf32> to vector<16x32xbf16>
    %cst_14 = arith.constant dense<0.000000e+00> : vector<16x8xf32>
    %17 = tpu.matmul %16, %14, %cst_14 {dimension_numbers = #tpu.dot_dimension_numbers<[1], [0], [0], [1], [0, 0, 1, 1], [], []>} : vector<16x32xbf16>, vector<32x8xbf16>, vector<16x8xf32> -> vector<16x8xf32>
    %18 = vector.broadcast %15 : vector<1x8xf32> to vector<16x8xf32>
    %19 = arith.addf %17, %18 : vector<16x8xf32>
    %c0_15 = arith.constant 0 : index
    %c0_16 = arith.constant 0 : index
    %20 = vector.load %arg8[%c0_15, %c0_16] : memref<16x8xf32, #tpu.memory_space<vmem>>, vector<16x8xf32>
    tpu.vector_store %arg8[%c0_15, %c0_16], %19 {strides = array<i32>} : memref<16x8xf32, #tpu.memory_space<vmem>>, vector<16x8xf32>,
    return
  }
  func.func @transform_0(%arg0: i32) -> (i32, i32) {
    %c0_i32 = arith.constant 0 : i32
    %c0_i32_0 = arith.constant 0 : i32
    return %arg0, %c0_i32 : i32, i32
  }
  func.func @transform_1(%arg0: i32) -> (i32, i32) {
    %c0_i32 = arith.constant 0 : i32
    %c0_i32_0 = arith.constant 0 : i32
    %c0_i32_1 = arith.constant 0 : i32
    return %c0_i32, %c0_i32_0 : i32, i32
  }
  func.func @transform_2(%arg0: i32) -> (i32, i32) {
    %c0_i32 = arith.constant 0 : i32
    %c0_i32_0 = arith.constant 0 : i32
    %c0_i32_1 = arith.constant 0 : i32
    return %c0_i32, %c0_i32_0 : i32, i32
  }
  func.func @transform_3(%arg0: i32) -> (i32, i32) {
    %c0_i32 = arith.constant 0 : i32
    %c0_i32_0 = arith.constant 0 : i32
    %c0_i32_1 = arith.constant 0 : i32
    return %c0_i32, %c0_i32_0 : i32, i32
  }
  func.func @transform_4(%arg0: i32) -> (i32, i32) {
    %c0_i32 = arith.constant 0 : i32
    %c0_i32_0 = arith.constant 0 : i32
    %c0_i32_1 = arith.constant 0 : i32
    return %c0_i32, %c0_i32_0 : i32, i32
  }
  func.func @transform_5(%arg0: i32) -> (i32, i32) {
    %c0_i32 = arith.constant 0 : i32
    %c0_i32_0 = arith.constant 0 : i32
    %c0_i32_1 = arith.constant 0 : i32
    return %c0_i32, %c0_i32_0 : i32, i32
  }
  func.func @transform_6(%arg0: i32) -> (i32, i32) {
    %c0_i32 = arith.constant 0 : i32
    %c0_i32_0 = arith.constant 0 : i32
    %c0_i32_1 = arith.constant 0 : i32
    return %c0_i32, %c0_i32_0 : i32, i32
  }
  func.func @transform_7(%arg0: i32) -> (i32, i32) {
    %c0_i32 = arith.constant 0 : i32
    %c0_i32_0 = arith.constant 0 : i32
    return %arg0, %c0_i32 : i32, i32
  }
}

</mosaic_0001>

<bundles_post_ra>
// kernel: fully_connected_forward.1
= control target key start
LH: loop header
LB: loop body
LE: loop exit
PB: predicated region body
PF: predicated region fallthrough
CT: control target
= control target key end

     0   :  { %v300_v0 = vmov 0.0   ;;  %vm301_vm0 = vmmov 0   ;;  %vm49_vm1 = vcmask 130048   ;;  %vm120_vm2 = vcmask 261120   ;;  %s377_s1 = inlined_call_operand.vmem [shape: bf16[16,32], index: 1, kind: input, shape index: {}]   ;;  %s378_s0 = inlined_call_operand.vmem [shape: bf16[16,16], index: 0, kind: input, shape index: {}]   ;;  %s379_s3 = inlined_call_operand.vmem [shape: bf16[32,32], index: 3, kind: input, shape index: {}]   ;;  %s380_s2 = inlined_call_operand.vmem [shape: f32[1,32], index: 2, kind: input, shape index: {}]   ;;  %s381_s5 = inlined_call_operand.vmem [shape: bf16[32,8], index: 5, kind: input, shape index: {}]   ;;  %s382_s4 = inlined_call_operand.vmem [shape: f32[1,32], index: 4, kind: input, shape index: {}]   ;;  %s383_s6 = inlined_call_operand.vmem [shape: f32[1,8], index: 6, kind: input, shape index: {}]   ;;  %s384_s7 = inlined_call_operand.vmem [shape: f32[16,8], index: 7, kind: output, shape index: {}]  }
   0x1   :  { %262 = vmatprep.subr.bf16.mxu0 %v300_v0  ;;  %v286_v1 = vld [vmem:[%s377_s1] sm:$0xff]   ;;  %264 = vmatprep.mubr.msk.bf16.mxu0 %vm301_vm0, %v300_v0  ;;  %v289_v4 = vld [vmem:[%s379_s3 + $0x8] sm:$0xff]   ;;  %vm235_vm3 = vcmask 64512  }
   0x2   :  { %v287_v2 = vld [vmem:[%s378_s0] sm:$0xff]   ;;  %268 = vmatprep.subr.bf16.mxu1 %v300_v0  ;;  %272 = vmatprep.mubr.msk.bf16.mxu1 %vm301_vm0, %v300_v0  ;;  %v291_v16 = vld [vmem:[%s381_s5 + $0x8] sm:$0xff]  }
   0x3   :  { %263 = vmatpush3.bf16.msra.mxu0 %v286_v1  ;;  %v288_v3 = vld [vmem:[%s379_s3] sm:$0xff]  }
   0x4   :  { %276 = vmatprep.subr.bf16.mxu0 %v300_v0  ;;  %269 = vmatpush3.bf16.msra.mxu1 %v288_v3  ;;  %v242_v5 = vld [vmem:[%s380_s2] ss:$0 sm:$0xff] }
   0x5   :  { %270 = vmatprep.subr.bf16.mxu1 %v300_v0  ;;  %v290_v15 = vld [vmem:[%s381_s5] sm:$0xff]  }
   0x6   :  { %265 = vmatmul.mubr.msk.bf16.vlgmr.msra.gmra.mrb[0].mxu0 %vm49_vm1, %v287_v2  ;;  %v246_v17 = vld [vmem:[%s382_s4] ss:$0 sm:$0xff] }
   0x7   :  { %280 = vmatprep.mubr.msk.bf16.mxu0 %vm301_vm0, %v300_v0  ;;  %277 = vmatpush3.bf16.msra.mxu0 %v290_v15  ;;  %v250_v27 = vld [vmem:[%s383_s6] ss:$0 sm:$0xff] }
   0x8   :  { %271 = vmatpush3.bf16.msra.mxu1 %v289_v4  ;;  %278 = vmatprep.subr.bf16.mxu0 %v300_v0 }
   0xb   :  { %279 = vmatpush3.bf16.msra.mxu0 %v291_v16 }
  0xd9   :  { %v87_v6 = vpop.f32.mrb[0].mxu0 }
  0xda   :  { %v88_v7 = vadd.f32 %v242_v5, %v87_v6  ;;  %v266_v8 = vpop.f32.mrb[1].mxu0 }
  0xdb   :  { %v90_v9 = vpop.f32.mrb[2].mxu0 }
  0xdc   :  { %v91_v10 = vadd.f32 %v242_v5, %v90_v9  ;;  %v267_v11 = vpop.f32.mrb[3].mxu0  ;;  %292 = vtanh.f32 %v88_v7 }
  0xde   :  { %294 = vtanh.f32 %v91_v10 }
  0xe6   :  { %v293_v12 = vpop.eup %292 }
  0xe8   :  { %v295_v13 = vpop.eup %294 }
  0xe9   :  { %v101_v14 = vpack.c.bf16 %v295_v13, %v293_v12 }
  0xeb   :  { %273 = vmatmul.mubr.msk.bf16.vlgmr.msra.gmra.mrb[0].mxu1 %vm120_vm2, %v101_v14 }
 0x1be   :  { %v158_v18 = vpop.f32.mrb[0].mxu1 }
 0x1bf   :  { %v159_v19 = vadd.f32 %v246_v17, %v158_v18  ;;  %v274_v20 = vpop.f32.mrb[1].mxu1 }
 0x1c0   :  { %v161_v21 = vpop.f32.mrb[2].mxu1 }
 0x1c1   :  { %v162_v22 = vadd.f32 %v246_v17, %v161_v21  ;;  %v275_v23 = vpop.f32.mrb[3].mxu1  ;;  %296 = vtanh.f32 %v159_v19 }
 0x1c3   :  { %298 = vtanh.f32 %v162_v22 }
 0x1cb   :  { %v297_v24 = vpop.eup %296 }
 0x1cd   :  { %v299_v25 = vpop.eup %298 }
 0x1ce   :  { %v172_v26 = vpack.c.bf16 %v299_v25, %v297_v24 }
 0x1d0   :  { %281 = vmatmul.mubr.msk.bf16.vlgmr.msra.gmra.mrb[4].mxu0 %vm120_vm2, %v172_v26 }
 0x2a3   :  { %v228_v28 = vpop.f32.mrb[4].mxu0 }
 0x2a4   :  { %v229_v29 = vadd.f32 %v250_v27, %v228_v28  ;;  %v282_v30 = vpop.f32.mrb[5].mxu0 }
 0x2a5   :  { %v231_v31 = vpop.f32.mrb[6].mxu0 }
 0x2a6   :  { %236 = vst.msk [vmem:[%s384_s7] sm:$0xff] %vm235_vm3, %v229_v29  ;;  %v232_v32 = vadd.f32 %v250_v27, %v231_v31  ;;  %v283_v33 = vpop.f32.mrb[7].mxu0 }
 0x2a8   :  { %237 = vst.msk [vmem:[%s384_s7 + $0x8] sm:$0xff] %vm235_vm3, %v232_v32 }

</bundles_post_ra>
